<compile_context>
chip_gen: v5e
topology: v5e:2x2
jax: 0.10.0
libtpu: 0.0.40
codegen_flags: <defaults>
</compile_context>

<pallas_src>
import functools
import math

import jax
import jax.numpy as jnp
from jax.experimental import pallas as pl
from jax.experimental.pallas import tpu as pltpu


def _round_up(x, m):
    return (x + m - 1) // m * m


# --------------------------------------------------------------------------- #
# Path A: table resident in VMEM, gather via one-hot matmul on the MXU.
# --------------------------------------------------------------------------- #
def _embed_onehot_kernel(ids_ref, table_ref, out_ref, *, scale, vocab):
    # ids_ref   : VMEM (tok_blk, 1) int32   -- this block's token ids
    # table_ref : VMEM (V, D)               -- full embedding table (constant block)
    # out_ref   : VMEM (tok_blk, D)
    ids = ids_ref[...]                                                  # (tok_blk, 1)
    iota = jax.lax.broadcasted_iota(jnp.int32, (ids.shape[0], vocab), 1)
    onehot = (ids == iota).astype(table_ref.dtype)                      # (tok_blk, V)
    rows = jnp.dot(onehot, table_ref[...], preferred_element_type=jnp.float32)
    out_ref[...] = (rows * scale).astype(out_ref.dtype)


# --------------------------------------------------------------------------- #
# Path B: table in HBM; all row DMAs of a block issued up front, then drained.
# --------------------------------------------------------------------------- #
def _embed_hbm_gather_kernel(ids_ref, table_hbm, out_ref, rows_vmem, sem,
                             *, scale, tok_blk):
    # ids_ref   : SMEM scalar-prefetch (n_tok_pad,) int32
    # table_hbm : HBM ref (V, D)            (memory_space=pl.ANY)
    # out_ref   : VMEM (tok_blk, D)
    # rows_vmem : VMEM scratch (tok_blk, D) -- gathered rows staging buffer
    # sem       : DMA semaphore (1,) shared by all row copies of this block
    base = pl.program_id(0) * tok_blk

    # Issue every row-gather DMA for this block immediately (gather is
    # latency/descriptor bound, not bandwidth bound -> maximize in-flight copies).
    @pl.loop(0, tok_blk)
    def _issue(t):
        tok = ids_ref[base + t]
        pltpu.make_async_copy(
            table_hbm.at[tok], rows_vmem.at[t], sem.at[0]).start()

    # Drain: every copy has identical size, so tok_blk equal-sized waits consume
    # exactly the bytes signaled above; data is only read after the full drain.
    @pl.loop(0, tok_blk)
    def _drain(t):
        pltpu.make_async_copy(
            table_hbm.at[0], rows_vmem.at[0], sem.at[0]).wait()

    # Single full-vreg, lane/sublane-dense scaled store of the whole block.
    out_ref[...] = (rows_vmem[...].astype(jnp.float32) * scale).astype(out_ref.dtype)


# --------------------------------------------------------------------------- #
# Wrapper
# --------------------------------------------------------------------------- #
def _choose_tok_blk(n_tok, d_model, itemsize, vocab, use_vmem_table,
                    vmem_block_budget=8 * 1024 * 1024):
    """Largest multiple-of-8 token block whose per-block VMEM footprint fits."""
    if use_vmem_table:
        # one-hot (tok_blk, V) f32 + double-buffered out + f32 matmul result
        per_tok = vocab * 4 + 2 * d_model * itemsize + d_model * 4
    else:
        # staging rows + double-buffered out + f32 scaled copy
        per_tok = 3 * d_model * itemsize + d_model * 4
    blk = vmem_block_budget // max(per_tok, 1)
    blk = max(8, min(256, (blk // 8) * 8))
    return min(blk, _round_up(n_tok, 8))


def input_embedding(ids, table, *, tok_blk=None, force_hbm_gather=False,
                    vmem_table_budget=4 * 1024 * 1024):
    """ids: [B, S] int, table: [V, D] -> [B, S, D] (table.dtype)."""
    B, S = ids.shape
    V, D = table.shape
    n_tok = B * S
    scale = float(math.sqrt(D))
    itemsize = jnp.dtype(table.dtype).itemsize

    # Clamp ids (matches jnp.take clamp semantics; prevents OOB DMA).
    flat_ids = jnp.clip(ids.reshape(n_tok).astype(jnp.int32), 0, V - 1)

    table_bytes = V * D * itemsize
    use_vmem_table = (not force_hbm_gather) and table_bytes <= vmem_table_budget

    if tok_blk is None:
        tok_blk = _choose_tok_blk(n_tok, D, itemsize, V, use_vmem_table)
    n_tok_pad = _round_up(n_tok, tok_blk)
    n_blocks = n_tok_pad // tok_blk
    if n_tok_pad != n_tok:
        flat_ids = jnp.pad(flat_ids, (0, n_tok_pad - n_tok))

    if use_vmem_table:
        # ---- small-vocab fast path: table resident in VMEM, one-hot MXU gather ----
        ids_2d = flat_ids.reshape(n_tok_pad, 1)
        cost = pl.CostEstimate(
            flops=int(2 * n_tok_pad * V * D),
            transcendentals=0,
            bytes_accessed=int(table_bytes + n_tok_pad * 4
                               + n_tok_pad * D * itemsize),
        )
        out_flat = pl.pallas_call(
            functools.partial(_embed_onehot_kernel, scale=scale, vocab=V),
            out_shape=jax.ShapeDtypeStruct((n_tok_pad, D), table.dtype),
            grid_spec=pltpu.PrefetchScalarGridSpec(
                num_scalar_prefetch=0,
                grid=(n_blocks,),
                in_specs=[
                    pl.BlockSpec((tok_blk, 1), lambda i: (i, 0)),   # ids block
                    pl.BlockSpec((V, D), lambda i: (0, 0)),         # whole table
                ],
                out_specs=pl.BlockSpec((tok_blk, D), lambda i: (i, 0)),
            ),
            compiler_params=pltpu.CompilerParams(
                dimension_semantics=("parallel",)),
            cost_estimate=cost,
        )(ids_2d, table)
    else:
        # ---- large-vocab path: HBM row-DMA gather, whole block in flight ----
        cost = pl.CostEstimate(
            flops=int(n_tok_pad * D),
            transcendentals=0,
            bytes_accessed=int(2 * n_tok_pad * D * itemsize + n_tok_pad * 4),
        )
        out_flat = pl.pallas_call(
            functools.partial(_embed_hbm_gather_kernel, scale=scale,
                              tok_blk=tok_blk),
            out_shape=jax.ShapeDtypeStruct((n_tok_pad, D), table.dtype),
            grid_spec=pltpu.PrefetchScalarGridSpec(
                num_scalar_prefetch=1,                              # flat_ids -> SMEM
                grid=(n_blocks,),
                in_specs=[pl.BlockSpec(memory_space=pl.ANY)],       # table stays in HBM
                out_specs=pl.BlockSpec((tok_blk, D), lambda i, ids: (i, 0)),
                scratch_shapes=[
                    pltpu.VMEM((tok_blk, D), table.dtype),
                    pltpu.SemaphoreType.DMA((1,)),
                ],
            ),
            compiler_params=pltpu.CompilerParams(
                dimension_semantics=("parallel",)),
            cost_estimate=cost,
        )(flat_ids, table)

    return out_flat[:n_tok].reshape(B, S, D)


if __name__ == "__main__":
    # Small deterministic shapes consistent with the module's forward.
    B, S = 2, 8
    VOCAB, D_MODEL = 64, 128

    key = jax.random.PRNGKey(0)
    k_tab, k_ids = jax.random.split(key)

    table = jax.random.normal(k_tab, (VOCAB, D_MODEL), dtype=jnp.float32)
    ids = jax.random.randint(k_ids, (B, S), 0, VOCAB, dtype=jnp.int32)

    # Path A (table fits in VMEM -> one-hot MXU gather).
    out = jax.block_until_ready(input_embedding(ids, table))
    ref = jnp.take(table, ids, axis=0) * math.sqrt(D_MODEL)
    assert out.shape == (B, S, D_MODEL)
    assert jnp.allclose(out, ref, atol=1e-5, rtol=1e-5)

    # Path B (forced HBM row-DMA gather path, as used for large vocabularies).
    V2, S2 = 512, 24
    k_tab2, k_ids2 = jax.random.split(k_tab)
    table2 = jax.random.normal(k_tab2, (V2, D_MODEL), dtype=jnp.float32)
    ids2 = jax.random.randint(k_ids2, (B, S2), 0, V2, dtype=jnp.int32)
    out2 = jax.block_until_ready(
        input_embedding(ids2, table2, force_hbm_gather=True))
    ref2 = jnp.take(table2, ids2, axis=0) * math.sqrt(D_MODEL)
    assert out2.shape == (B, S2, D_MODEL)
    assert jnp.allclose(out2, ref2, atol=1e-5, rtol=1e-5)

    print("KERNEL_OK")
</pallas_src>

<mosaic_0001>
module attributes {stable_mosaic.version = 11 : i64} {
  func.func @_embed_onehot_kernel(%arg0: i32, %arg1: memref<16x1xi32, #tpu.memory_space<vmem>>, %arg2: memref<64x128xf32, #tpu.memory_space<vmem>>, %arg3: memref<16x128xf32, #tpu.memory_space<vmem>>) attributes {dimension_semantics = [#tpu.dimension_semantics<parallel>], iteration_bounds = array<i64: 1>, scalar_prefetch = 0 : i64, scratch_operands = 0 : i64, tpu.core_type = #tpu.core_type<tc>, window_params = [{transform_indices = @transform_0, window_bounds = array<i64: 16, 1>}, {pipeline_mode = #tpu.pipeline_mode<synchronous>, transform_indices = @transform_1, window_bounds = array<i64: 64, 128>}, {transform_indices = @transform_2, window_bounds = array<i64: 16, 128>}]} {
    %c0 = arith.constant 0 : index
    %c0_0 = arith.constant 0 : index
    %0 = vector.load %arg1[%c0, %c0_0] : memref<16x1xi32, #tpu.memory_space<vmem>>, vector<16x1xi32>
    %1 = tpu.iota {dimensions = array<i32: 1>} : vector<16x64xi32>
    %2 = vector.broadcast %0 : vector<16x1xi32> to vector<16x64xi32>
    %3 = arith.cmpi eq, %2, %1 : vector<16x64xi32>
    %4 = arith.extui %3 : vector<16x64xi1> to vector<16x64xi32>
    %5 = arith.sitofp %4 : vector<16x64xi32> to vector<16x64xf32>
    %c0_1 = arith.constant 0 : index
    %c0_2 = arith.constant 0 : index
    %6 = vector.load %arg2[%c0_1, %c0_2] : memref<64x128xf32, #tpu.memory_space<vmem>>, vector<64x128xf32>
    %cst = arith.constant dense<0.000000e+00> : vector<16x128xf32>
    %7 = tpu.matmul %5, %6, %cst {dimension_numbers = #tpu.dot_dimension_numbers<[1], [0], [0], [1], [0, 0, 1, 1], [], []>} : vector<16x64xf32>, vector<64x128xf32>, vector<16x128xf32> -> vector<16x128xf32>
    %cst_3 = arith.constant 11.3137083 : f32
    %8 = vector.broadcast %cst_3 : f32 to vector<16x128xf32>
    %9 = arith.mulf %7, %8 : vector<16x128xf32>
    %c0_4 = arith.constant 0 : index
    %c0_5 = arith.constant 0 : index
    %10 = vector.load %arg3[%c0_4, %c0_5] : memref<16x128xf32, #tpu.memory_space<vmem>>, vector<16x128xf32>
    tpu.vector_store %arg3[%c0_4, %c0_5], %9 {strides = array<i32>} : memref<16x128xf32, #tpu.memory_space<vmem>>, vector<16x128xf32>,
    return
  }
  func.func @transform_0(%arg0: i32) -> (i32, i32) {
    %c0_i32 = arith.constant 0 : i32
    %c0_i32_0 = arith.constant 0 : i32
    return %arg0, %c0_i32 : i32, i32
  }
  func.func @transform_1(%arg0: i32) -> (i32, i32) {
    %c0_i32 = arith.constant 0 : i32
    %c0_i32_0 = arith.constant 0 : i32
    %c0_i32_1 = arith.constant 0 : i32
    return %c0_i32, %c0_i32_0 : i32, i32
  }
  func.func @transform_2(%arg0: i32) -> (i32, i32) {
    %c0_i32 = arith.constant 0 : i32
    %c0_i32_0 = arith.constant 0 : i32
    return %arg0, %c0_i32 : i32, i32
  }
}

</mosaic_0001>

<bundles_post_ra>
// kernel: tpu_custom_call.1
= control target key start
LH: loop header
LB: loop body
LE: loop exit
PB: predicated region body
PF: predicated region fallthrough
CT: control target
= control target key end

     0   :  { %7 = vsyncpa [#allocation3], 0  ;;  %s215_s0 = inlined_call_operand.vmem [shape: s32[16,1], index: 0, kind: input, shape index: {}]   ;;  %s216_s1 = inlined_call_operand.hbm [shape: f32[64,128], index: 1, kind: input, shape index: {}]   ;;  %s217_s2 = inlined_call_operand.hbm [shape: f32[16,128], index: 2, kind: output, shape index: {}]  }
   0x1   :  { %8 = vsyncpa [#allocation4], 0  ;;  %s15_s11 = sshll.u32 %s216_s1, 4  ;;  %s176_s12 = smov [#allocation2]   ;;  %s16_s11 = int_to_ptr.hbm [resolvable:$true] %s15_s11 }
   0x2   :  { %s17_s13 = sshll.u32 %s176_s12, 4  ;;  %s177_s14 = smov 128   ;;  %s18_s13 = int_to_ptr.vmem [resolvable:$true] %s17_s13 }
   0x3   :  { %s178_s15 = smov 8  }
   0x4   :  { %23 = dma.hbm_to_vmem [thread:$0]  %s16_s11, 1024, %s18_s13, [#allocation3], %s177_s14, %s177_s14, %s178_s15  }
   0x5   :  { %172 = dma.done.wait [#allocation3], 1024  }
   0x6   :  { %173 = vsyncadd [#allocation3], 4294966272  ;;  %v179_v0 = vmov 0   ;;  %v28_v1 = vld [vmem:[%s215_s0] sm:$0xff]  ;;  %v51_v2 = vld [vmem:[#allocation2 + $0x38] sm:$0xff]  ;;  %v30_v11 = vlaneseq  ;;  %vm52_vm0 = vcmask 523264  }
   0x7   :  { %123 = vset.pattern.permute.xlu0 %v179_v0  ;;  %67 = vmatpush.msra.mxu0 %v51_v2  ;;  %v50_v3 = vld [vmem:[#allocation2 + $0x30] sm:$0xff]  ;;  %v49_v4 = vld [vmem:[#allocation2 + $0x28] sm:$0xff]  ;;  %v48_v5 = vld [vmem:[#allocation2 + $0x20] sm:$0xff]  ;;  %v180_v14 = vmov 0.0   ;;  %s92_s22 = sshll.u32 %s217_s2, 4  ;;  %s93_s22 = int_to_ptr.hbm [resolvable:$true] %s92_s22 }
   0x8   :  { %33 = vperm.xlu0 %123, %v28_v1   ;;  %109 = vmatpush.msra.mxu1 %v51_v2  ;;  %v29_v6 = vld [vmem:[%s215_s0 + $0x8] sm:$0xff]  ;;  %v47_v7 = vld [vmem:[#allocation2 + $0x18] sm:$0xff]  ;;  %v46_v8 = vld [vmem:[#allocation2 + $0x10] sm:$0xff]  ;;  %v31_v12 = vand.u32 127, %v30_v11  ;;  %s181_s0 = smov [#allocation5]  }
   0x9   :  { %68 = vmatpush.msra.mxu0 %v50_v3  ;;  %v45_v9 = vld [vmem:[#allocation2 + $0x8] sm:$0xff]  ;;  %v44_v10 = vld [vmem:[#allocation2] sm:$0xff]  ;;  %s90_s19 = sshll.u32 %s181_s0, 4  ;;  %s91_s19 = int_to_ptr.vmem [resolvable:$true] %s90_s19 }
   0xa   :  { %110 = vmatpush.msra.mxu1 %v50_v3 }
   0xb   :  { %69 = vmatpush.msra.mxu0 %v49_v4 }
   0xc   :  { %111 = vmatpush.msra.mxu1 %v49_v4 }
   0xd   :  { %70 = vmatpush.msra.mxu0 %v48_v5 }
   0xe   :  { %112 = vmatpush.msra.mxu1 %v48_v5 }
   0xf   :  { %71 = vmatpush.msra.mxu0 %v47_v7 }
  0x10   :  { %36 = vperm.xlu0 %123, %v29_v6   ;;  %113 = vmatpush.msra.mxu1 %v47_v7 }
  0x11   :  { %72 = vmatpush.msra.mxu0 %v46_v8 }
  0x12   :  { %114 = vmatpush.msra.mxu1 %v46_v8 }
  0x13   :  { %73 = vmatpush.msra.mxu0 %v45_v9 }
  0x14   :  { %115 = vmatpush.msra.mxu1 %v45_v9 }
  0x15   :  { %74 = vmatpush.msra.mxu0 %v44_v10 }
  0x16   :  { %116 = vmatpush.msra.mxu1 %v44_v10 }
  0x7a   :  { %v34_v13 = vpop.permute.xlu0 %33 }
  0x7b   :  { %vm38_vm1 = vcmp.eq.s32.totalorder %v34_v13, %v31_v12 }
  0x7c   :  { %v105_v15 = vsel %vm38_vm1, 1.0, %v180_v14 }
  0x7d   :  { %107 = vmatmul.msk.f32.vlgmr.msra.gmra.mxu0 %vm52_vm0, %v105_v15 }
  0x82   :  { %v37_v16 = vpop.permute.xlu0 %36 }
  0x83   :  { %vm39_vm2 = vcmp.eq.s32.totalorder %v37_v16, %v31_v12 }
  0x84   :  { %v106_v17 = vsel %vm39_vm2, 1.0, %v180_v14 }
  0x85   :  { %108 = vmatmul.msk.f32.vlgmr.msra.gmra.mxu1 %vm52_vm0, %v106_v17 }
  0xfa   :  { %v76_v18 = vpop.f32.mrf.mxu0 }
  0xfb   :  { %v82_v19 = vmul.f32 11.313708, %v76_v18 }
  0xfd   :  { %84 = vst [vmem:[#allocation5] sm:$0xff] %v82_v19 }
 0x102   :  { %v79_v20 = vpop.f32.mrf.mxu1 }
 0x103   :  { %v83_v21 = vmul.f32 11.313708, %v79_v20 }
 0x105   :  { %85 = vst [vmem:[#allocation5 + $0x8] sm:$0xff] %v83_v21 }
 0x106   :  { %98 = dma.vmem_to_hbm [thread:$0]  %s91_s19, 256, %s93_s22, [#allocation4], %s177_s14, %s177_s14, %s178_s15  }
 0x107   :  { %174 = dma.done.wait [#allocation4], 256  }
 0x108   :  { %175 = vsyncadd [#allocation4], 4294967040 }
 0x109   :  { %103 = vsyncpa [#allocation3], 1 }
 0x10a   :  { %104 = vsyncpa [#allocation4], 1 }

</bundles_post_ra>
